<compile_context>
chip_gen: v6e
topology: v6e:2x2x1
jax: 0.10.0
libtpu: 0.0.40
codegen_flags: <defaults>
</compile_context>

<pallas_src>
import math

import jax
import jax.numpy as jnp
from jax.experimental import pallas as pl
from jax.experimental.pallas import tpu as pltpu


LANE = 128       # lane width of a vreg (last dim)
SUBLANE = 8      # sublane width of a vreg (second-to-last dim)
IN_GRAIN = 16    # grain for the (narrow) input feature stream (bf16 packing)


def _round_up(n, m):
    return ((n + m - 1) // m) * m


def _vmem_budget_bytes():
    """VMEM budget for the grid-free (whole-slab-resident) path."""
    try:
        cap = pltpu.get_tpu_info().vmem_capacity_bytes
    except Exception:
        cap = 64 * 1024 * 1024
    # Stay well under the default scoped limit (16 MiB on v5e) and leave the
    # compiler headroom on v7x (64 MiB physical per TensorCore).
    return min(cap // 4, 12 * 1024 * 1024)


# ---------------------------------------------------------------------------
# Kernel
# ---------------------------------------------------------------------------
def _make_mlp_kernel(relu_flags):
    """Fused MLP kernel for a fixed sequence of (folded) Linear (+ReLU) layers.

    Ref order: (x_ref, w0, b0, w1, b1, ..., y_ref)
      x_ref : (TB, in_w)   bf16 activations (narrow, unpadded feature stream)
      w_i   : (in_p, out_p) bf16, zero-padded (transposed vs torch Linear.weight)
      b_i   : (1, out_p)   f32, zero-padded
      y_ref : (TB, out_p)  f32 (lane-dense store)
    """
    n_layers = len(relu_flags)

    def kernel(*refs):
        x_ref = refs[0]
        y_ref = refs[1 + 2 * n_layers]
        h = x_ref[...]                                   # bf16, fed to MXU as-is
        for i, use_relu in enumerate(relu_flags):
            w = refs[1 + 2 * i][...]                     # bf16 (MXU input)
            b = refs[2 + 2 * i][...]                     # f32 bias
            acc = jnp.dot(h, w, preferred_element_type=jnp.float32) + b
            if use_relu:
                acc = jnp.maximum(acc, 0.0)
            # TODO(synk): nn.Dropout is identity here (eval-mode; no RNG mask /
            # 1/(1-p) scaling of PyTorch training-mode dropout).
            h = acc if i == n_layers - 1 else acc.astype(jnp.bfloat16)
        y_ref[...] = h.astype(y_ref.dtype)               # lane-dense f32 store

    return kernel


# ---------------------------------------------------------------------------
# pallas_call wrapper
# ---------------------------------------------------------------------------
def _fused_mlp(x_pad, weights_pad, biases_pad, relu_flags, *, block_b=None):
    """Runs the whole Linear/ReLU stack in one pallas_call on padded slabs."""
    B_pad, in_w = x_pad.shape
    out_pad = weights_pad[-1].shape[1]
    kernel = _make_mlp_kernel(tuple(relu_flags))

    param_args, param_bytes = [], 0
    for w, b in zip(weights_pad, biases_pad):
        param_args += [w, b]
        param_bytes += w.size * w.dtype.itemsize + b.size * b.dtype.itemsize

    # Per-row activation bytes: bf16 in + f32 out.
    slab_bytes = B_pad * (in_w * 2 + out_pad * 4) + param_bytes

    if block_b is None:
        # Grid-free until the slab actually pressures VMEM; then a large tile
        # (512-2048 rows) to stay near the HBM roofline.
        block_b = 0 if slab_bytes <= _vmem_budget_bytes() else 1024
    if block_b and block_b >= B_pad:
        block_b = 0

    if not block_b:
        # Grid-free path: whole arrays resident in VMEM, single invocation.
        vmem = pl.BlockSpec(memory_space=pltpu.MemorySpace.VMEM)
        return pl.pallas_call(
            kernel,
            out_shape=jax.ShapeDtypeStruct((B_pad, out_pad), jnp.float32),
            in_specs=[vmem] * (1 + len(param_args)),
            out_specs=vmem,
        )(x_pad, *param_args)

    # Batch-tiled path: stream activation tiles, keep weights/biases resident
    # (constant block index -> no re-DMA across grid steps).
    block_b = _round_up(block_b, SUBLANE)
    B_grid = _round_up(B_pad, block_b)           # pad batch: zero rows harmless
    if B_grid != B_pad:
        x_pad = jnp.pad(x_pad, ((0, B_grid - B_pad), (0, 0)))

    in_specs = [pl.BlockSpec((block_b, in_w), lambda i: (i, 0))]
    for w, b in zip(weights_pad, biases_pad):
        in_specs.append(pl.BlockSpec(w.shape, lambda i: (0, 0)))
        in_specs.append(pl.BlockSpec(b.shape, lambda i: (0, 0)))
    out_specs = pl.BlockSpec((block_b, out_pad), lambda i: (i, 0))

    return pl.pallas_call(
        kernel,
        out_shape=jax.ShapeDtypeStruct((B_grid, out_pad), jnp.float32),
        grid=(B_grid // block_b,),
        in_specs=in_specs,
        out_specs=out_specs,
        compiler_params=pltpu.CompilerParams(
            dimension_semantics=("parallel",),   # shard batch across TCs (v7x)
        ),
    )(x_pad, *param_args)


# ---------------------------------------------------------------------------
# Parameter construction (mirrors PyTorch module __init__)
# ---------------------------------------------------------------------------
def init_autoencoder_params(key, input_dim, hidden_dim, output_dim, n_layers):
    """Returns (weights, biases, relu_flags) for the stacked Linear layers.

    weights[i]: (in_dim, out_dim) f32 (transposed vs torch Linear.weight)
    biases[i]:  (1, out_dim) f32
    """
    n_enc = n_layers // 2   # Encoder(input_dim, hidden_dim, n_layers//2, ...)
    n_dec = n_layers // 2   # Decoder(hidden_dim, output_dim, n_layers//2, ...)
    assert n_enc >= 1 and n_dec >= 1, "n_layers must be >= 2"

    layer_dims, relu_flags = [], []

    # Encoder: (n_enc-1) x [Linear -> ReLU -> Dropout], then Linear(hidden, hidden)
    for layer in range(n_enc - 1):
        layer_dims.append((input_dim if layer == 0 else hidden_dim, hidden_dim))
        relu_flags.append(True)
    layer_dims.append((hidden_dim, hidden_dim))
    relu_flags.append(False)

    # Decoder: (n_dec-1) x [Linear -> ReLU -> Dropout], then Linear(hidden, output)
    for _ in range(n_dec - 1):
        layer_dims.append((hidden_dim, hidden_dim))
        relu_flags.append(True)
    layer_dims.append((hidden_dim, output_dim))
    relu_flags.append(False)

    weights, biases = [], []
    for din, dout in layer_dims:
        key, kw, kb = jax.random.split(key, 3)
        bound = 1.0 / math.sqrt(din)   # PyTorch Linear default init range
        weights.append(jax.random.uniform(kw, (din, dout), jnp.float32,
                                          -bound, bound))
        biases.append(jax.random.uniform(kb, (1, dout), jnp.float32,
                                         -bound, bound))
    return weights, biases, relu_flags


def fold_linear_layers(weights, biases, relu_flags):
    """Folds consecutive affine layers with no nonlinearity between them.

    W_fold = W_a @ W_b, b_fold = b_a @ W_b + b_b (done in f32, so the only
    numeric difference vs the unfolded stack is dropping one bf16 requantize).
    """
    out_w, out_b, out_r = [], [], []
    i, n = 0, len(weights)
    while i < n:
        w, b, r = weights[i], biases[i], relu_flags[i]
        j = i
        while (not r) and j + 1 < n:
            j += 1
            w2, b2, r = weights[j], biases[j], relu_flags[j]
            w = w @ w2
            b = b @ w2 + b2
        out_w.append(w)
        out_b.append(b)
        out_r.append(r)
        i = j + 1
    return out_w, out_b, out_r


def pad_params(weights, biases):
    """Pads feature dims; weights cast to bf16 (MXU input).

    Layer 0's input dim is only padded to a 16-row grain (narrow bf16 HBM
    stream for x); all other dims are padded to 128 lanes so every inter-layer
    activation and the output store are lane-dense.
    """
    weights_pad, biases_pad = [], []
    for i, (w, b) in enumerate(zip(weights, biases)):
        din, dout = w.shape
        din_p = _round_up(din, IN_GRAIN) if i == 0 else _round_up(din, LANE)
        dout_p = _round_up(dout, LANE)
        w_pad = jnp.zeros((din_p, dout_p), jnp.bfloat16)
        w_pad = w_pad.at[:din, :dout].set(w.astype(jnp.bfloat16))
        b_pad = jnp.zeros((1, dout_p), jnp.float32).at[:, :dout].set(b)
        weights_pad.append(w_pad)
        biases_pad.append(b_pad)
    return weights_pad, biases_pad


# ---------------------------------------------------------------------------
# Autoencoder forward
# ---------------------------------------------------------------------------
def autoencoder_forward(x, params, weights_pad, biases_pad, relu_flags,
                        output_dim, training=True, block_b=None):
    if training is False:
        # Matches PyTorch: x = torch.cat([x, params], dim=1) (identity check
        # on `training`, exactly as the original module does).
        x = jnp.concatenate([x, params], axis=1)
    B, F = x.shape
    in_w = weights_pad[0].shape[0]
    assert F <= in_w, (F, in_w)

    B_pad = _round_up(max(B, SUBLANE), SUBLANE)
    x_pad = jnp.zeros((B_pad, in_w), jnp.bfloat16)
    x_pad = x_pad.at[:B, :F].set(x.astype(jnp.bfloat16))

    y_pad = _fused_mlp(x_pad, weights_pad, biases_pad, relu_flags,
                       block_b=block_b)
    return y_pad[:B, :output_dim]


def autoencoder_reference(x, params, weights, biases, relu_flags,
                          training=True):
    """Pure-JAX reference mirroring the kernel's bf16-in / f32-acc dtype plan
    (call with the same *folded* weights that the kernel uses)."""
    if training is False:
        x = jnp.concatenate([x, params], axis=1)
    h = x.astype(jnp.bfloat16)
    n = len(weights)
    for i, (w, b, r) in enumerate(zip(weights, biases, relu_flags)):
        h = jnp.dot(h, w.astype(jnp.bfloat16),
                    preferred_element_type=jnp.float32) + b
        if r:
            h = jnp.maximum(h, 0.0)
        if i < n - 1:
            h = h.astype(jnp.bfloat16)
    return h


# ---------------------------------------------------------------------------
# Demo
# ---------------------------------------------------------------------------
if __name__ == "__main__":
    # Module config: Autoencoder(input_dim, hidden_dim, output_dim, n_layers, dropout)
    input_dim, hidden_dim, output_dim = 16, 32, 16
    n_layers, dropout = 4, 0.1
    batch = 8

    key = jax.random.PRNGKey(0)
    kx, kp, kparams, kx2, kx3 = jax.random.split(key, 5)

    weights, biases, relu_flags = init_autoencoder_params(
        kparams, input_dim, hidden_dim, output_dim, n_layers)
    # Fold the back-to-back Linears (encoder tail + decoder head, no ReLU
    # between them) -> 3 fused layers instead of 4 for n_layers=4.
    weights_f, biases_f, relu_f = fold_linear_layers(weights, biases, relu_flags)
    weights_pad, biases_pad = pad_params(weights_f, biases_f)

    # --- training=True, small batch: grid-free fused kernel -----------------
    x = jax.random.normal(kx, (batch, input_dim), jnp.float32)
    params_vec = jax.random.normal(kp, (batch, 4), jnp.float32)

    y = autoencoder_forward(x, params_vec, weights_pad, biases_pad, relu_f,
                            output_dim, training=True)
    y = jax.block_until_ready(y)
    y_ref = autoencoder_reference(x, params_vec, weights_f, biases_f, relu_f,
                                  training=True)
    assert y.shape == (batch, output_dim), y.shape
    assert jnp.allclose(y, y_ref, atol=1e-4, rtol=1e-4), (
        float(jnp.max(jnp.abs(y - y_ref))))

    # --- training=False: concat(x, params) must match declared input_dim ----
    x_small = jax.random.normal(kx2, (batch, input_dim - 4), jnp.float32)
    y2 = autoencoder_forward(x_small, params_vec, weights_pad, biases_pad,
                             relu_f, output_dim, training=False)
    y2 = jax.block_until_ready(y2)
    y2_ref = autoencoder_reference(x_small, params_vec, weights_f, biases_f,
                                   relu_f, training=False)
    assert jnp.allclose(y2, y2_ref, atol=1e-4, rtol=1e-4), (
        float(jnp.max(jnp.abs(y2 - y2_ref))))

    # --- larger batch, forced batch-tiled grid (resident weights, parallel) -
    x_big = jax.random.normal(kx3, (1024, input_dim), jnp.float32)
    y3 = autoencoder_forward(x_big, None, weights_pad, biases_pad, relu_f,
                             output_dim, training=True, block_b=256)
    y3 = jax.block_until_ready(y3)
    y3_ref = autoencoder_reference(x_big, None, weights_f, biases_f, relu_f,
                                   training=True)
    assert y3.shape == (1024, output_dim), y3.shape
    assert jnp.allclose(y3, y3_ref, atol=1e-4, rtol=1e-4), (
        float(jnp.max(jnp.abs(y3 - y3_ref))))

    print("KERNEL_OK")
</pallas_src>

<mosaic_0001>
module attributes {stable_mosaic.version = 11 : i64} {
  func.func @kernel(%arg0: memref<8x16xbf16, #tpu.memory_space<vmem>>, %arg1: memref<16x128xbf16, #tpu.memory_space<vmem>>, %arg2: memref<1x128xf32, #tpu.memory_space<vmem>>, %arg3: memref<128x128xbf16, #tpu.memory_space<vmem>>, %arg4: memref<1x128xf32, #tpu.memory_space<vmem>>, %arg5: memref<128x128xbf16, #tpu.memory_space<vmem>>, %arg6: memref<1x128xf32, #tpu.memory_space<vmem>>, %arg7: memref<8x128xf32, #tpu.memory_space<vmem>>) attributes {dimension_semantics = [], scalar_prefetch = 0 : i64, scratch_operands = 0 : i64, tpu.core_type = #tpu.core_type<tc>} {
    %c0 = arith.constant 0 : index
    %c0_0 = arith.constant 0 : index
    %0 = vector.load %arg0[%c0, %c0_0] : memref<8x16xbf16, #tpu.memory_space<vmem>>, vector<8x16xbf16>
    %c0_1 = arith.constant 0 : index
    %c0_2 = arith.constant 0 : index
    %1 = vector.load %arg1[%c0_1, %c0_2] : memref<16x128xbf16, #tpu.memory_space<vmem>>, vector<16x128xbf16>
    %c0_3 = arith.constant 0 : index
    %c0_4 = arith.constant 0 : index
    %2 = vector.load %arg2[%c0_3, %c0_4] : memref<1x128xf32, #tpu.memory_space<vmem>>, vector<1x128xf32>
    %cst = arith.constant dense<0.000000e+00> : vector<8x128xf32>
    %3 = tpu.matmul %0, %1, %cst {dimension_numbers = #tpu.dot_dimension_numbers<[1], [0], [0], [1], [0, 0, 1, 1], [], []>} : vector<8x16xbf16>, vector<16x128xbf16>, vector<8x128xf32> -> vector<8x128xf32>
    %4 = vector.broadcast %2 : vector<1x128xf32> to vector<8x128xf32>
    %5 = arith.addf %3, %4 : vector<8x128xf32>
    %cst_5 = arith.constant 0.000000e+00 : f32
    %6 = vector.broadcast %cst_5 : f32 to vector<8x128xf32>
    %7 = arith.maximumf %5, %6 : vector<8x128xf32>
    %8 = arith.truncf %7 : vector<8x128xf32> to vector<8x128xbf16>
    %c0_6 = arith.constant 0 : index
    %c0_7 = arith.constant 0 : index
    %9 = vector.load %arg3[%c0_6, %c0_7] : memref<128x128xbf16, #tpu.memory_space<vmem>>, vector<128x128xbf16>
    %c0_8 = arith.constant 0 : index
    %c0_9 = arith.constant 0 : index
    %10 = vector.load %arg4[%c0_8, %c0_9] : memref<1x128xf32, #tpu.memory_space<vmem>>, vector<1x128xf32>
    %cst_10 = arith.constant dense<0.000000e+00> : vector<8x128xf32>
    %11 = tpu.matmul %8, %9, %cst_10 {dimension_numbers = #tpu.dot_dimension_numbers<[1], [0], [0], [1], [0, 0, 1, 1], [], []>} : vector<8x128xbf16>, vector<128x128xbf16>, vector<8x128xf32> -> vector<8x128xf32>
    %12 = vector.broadcast %10 : vector<1x128xf32> to vector<8x128xf32>
    %13 = arith.addf %11, %12 : vector<8x128xf32>
    %cst_11 = arith.constant 0.000000e+00 : f32
    %14 = vector.broadcast %cst_11 : f32 to vector<8x128xf32>
    %15 = arith.maximumf %13, %14 : vector<8x128xf32>
    %16 = arith.truncf %15 : vector<8x128xf32> to vector<8x128xbf16>
    %c0_12 = arith.constant 0 : index
    %c0_13 = arith.constant 0 : index
    %17 = vector.load %arg5[%c0_12, %c0_13] : memref<128x128xbf16, #tpu.memory_space<vmem>>, vector<128x128xbf16>
    %c0_14 = arith.constant 0 : index
    %c0_15 = arith.constant 0 : index
    %18 = vector.load %arg6[%c0_14, %c0_15] : memref<1x128xf32, #tpu.memory_space<vmem>>, vector<1x128xf32>
    %cst_16 = arith.constant dense<0.000000e+00> : vector<8x128xf32>
    %19 = tpu.matmul %16, %17, %cst_16 {dimension_numbers = #tpu.dot_dimension_numbers<[1], [0], [0], [1], [0, 0, 1, 1], [], []>} : vector<8x128xbf16>, vector<128x128xbf16>, vector<8x128xf32> -> vector<8x128xf32>
    %20 = vector.broadcast %18 : vector<1x128xf32> to vector<8x128xf32>
    %21 = arith.addf %19, %20 : vector<8x128xf32>
    %c0_17 = arith.constant 0 : index
    %c0_18 = arith.constant 0 : index
    %22 = vector.load %arg7[%c0_17, %c0_18] : memref<8x128xf32, #tpu.memory_space<vmem>>, vector<8x128xf32>
    tpu.vector_store %arg7[%c0_17, %c0_18], %21 {strides = array<i32>} : memref<8x128xf32, #tpu.memory_space<vmem>>, vector<8x128xf32>,
    return
  }
}

</mosaic_0001>

<bundles_post_ra>
// kernel: tpu_custom_call.1
= control target key start
LH: loop header
LB: loop body
LE: loop exit
PB: predicated region body
PF: predicated region fallthrough
CT: control target
= control target key end

     0   :  { %12 = vsyncpa [#allocation3], 0  ;;  %s708_s0 = inlined_call_operand.hbm [shape: bf16[8,16], index: 0, kind: input, shape index: {}]   ;;  %s709_s1 = inlined_call_operand.hbm [shape: bf16[16,128], index: 1, kind: input, shape index: {}]   ;;  %s710_s2 = inlined_call_operand.vmem [shape: f32[1,128], index: 2, kind: input, shape index: {}]   ;;  %s711_s3 = inlined_call_operand.hbm [shape: bf16[128,128], index: 3, kind: input, shape index: {}]   ;;  %s712_s4 = inlined_call_operand.vmem [shape: f32[1,128], index: 4, kind: input, shape index: {}]   ;;  %s713_s5 = inlined_call_operand.hbm [shape: bf16[128,128], index: 5, kind: input, shape index: {}]   ;;  %s714_s6 = inlined_call_operand.vmem [shape: f32[1,128], index: 6, kind: input, shape index: {}]   ;;  %s715_s7 = inlined_call_operand.hbm [shape: f32[8,128], index: 7, kind: output, shape index: {}]  }
   0x1   :  { %13 = vsyncpa [#allocation6], 0 }
   0x2   :  { %14 = vsyncpa [#allocation9], 0 }
   0x3   :  { %15 = vsyncpa [#allocation4], 0  ;;  %s606_s24 = smov [#allocation5]  }
   0x4   :  { %s31_s25 = sshll.u32 %s606_s24, 4  ;;  %s32_s25 = int_to_ptr.vmem [resolvable:$true] %s31_s25 }
   0x5   :  { %s506_s26 = scalar_lea.vmem %s32_s25, 128  ;;  %p511_p1 = scmp.lt.s32.totalorder %s32_s25, %s32_s25 }
   0x6   :  { %p507_p0 = scmp.ne.s32.totalorder %s32_s25, %s506_s26  ;;  %p512_p2 = scmp.lt.s32.totalorder %s506_s26, %s506_s26 }
   0x8   :  { %p513_p3 = por %p512_p2, %p511_p1 }
   0xa   :  { %p514_p4 = pnand %p513_p3, %p507_p0 }
   0xc   :  { %517 = shalt.err (!%p514_p4)
}
   0xd   :  { %s607_s27 = smov 64   ;;  %s608_s28 = smov 4  }
   0xe   :  { %37 = dma.hbm_to_vmem [thread:$0]  %s709_s1, 128, %s32_s25, [#allocation6], %s607_s27, %s607_s27, %s608_s28  }
   0xf   :  { %s609_s8 = smov [#allocation2]   ;;  %s610_s10 = smov [#allocation7]  }
  0x10   :  { %s22_s9 = sshll.u32 %s609_s8, 4  ;;  %s45_s11 = sshll.u32 %s610_s10, 4  ;;  %s23_s9 = int_to_ptr.vmem [resolvable:$true] %s22_s9  ;;  %s46_s11 = int_to_ptr.vmem [resolvable:$true] %s45_s11 }
  0x11   :  { %s526_s12 = scalar_lea.vmem %s23_s9, 64  ;;  %p531_p6 = scmp.lt.s32.totalorder %s23_s9, %s23_s9 }
  0x12   :  { %p527_p5 = scmp.ne.s32.totalorder %s23_s9, %s526_s12  ;;  %p532_p7 = scmp.lt.s32.totalorder %s526_s12, %s526_s12 }
  0x14   :  { %p533_p8 = por %p532_p7, %p531_p6 }
  0x16   :  { %p534_p9 = pnand %p533_p8, %p527_p5 }
  0x18   :  { %537 = shalt.err (!%p534_p9)
}
  0x19   :  { %25 = dma.hbm_to_vmem [thread:$0]  %s708_s0, 64, %s23_s9, [#allocation3]  }
  0x1a   :  { %s546_s15 = scalar_lea.vmem %s46_s11, 1024  ;;  %p551_p11 = scmp.lt.s32.totalorder %s46_s11, %s46_s11 }
  0x1b   :  { %p547_p10 = scmp.ne.s32.totalorder %s46_s11, %s546_s15  ;;  %p552_p12 = scmp.lt.s32.totalorder %s546_s15, %s546_s15 }
  0x1d   :  { %p553_p13 = por %p552_p12, %p551_p11 }
  0x1f   :  { %p554_p0 = pnand %p553_p13, %p547_p10 }
  0x21   :  { %557 = shalt.err (!%p554_p0)
}
  0x22   :  { %51 = dma.hbm_to_vmem [thread:$0]  %s711_s3, 1024, %s46_s11, [#allocation6], %s607_s27, %s607_s27, %s608_s28  }
  0x23   :  { %s611_s17 = smov [#allocation8]  }
  0x24   :  { %s59_s18 = sshll.u32 %s611_s17, 4  ;;  %s60_s18 = int_to_ptr.vmem [resolvable:$true] %s59_s18 }
  0x25   :  { %s566_s19 = scalar_lea.vmem %s60_s18, 1024  ;;  %p571_p2 = scmp.lt.s32.totalorder %s60_s18, %s60_s18 }
  0x26   :  { %p567_p1 = scmp.ne.s32.totalorder %s60_s18, %s566_s19  ;;  %p572_p3 = scmp.lt.s32.totalorder %s566_s19, %s566_s19 }
  0x28   :  { %p573_p4 = por %p572_p3, %p571_p2 }
  0x2a   :  { %p574_p5 = pnand %p573_p4, %p567_p1 }
  0x2c   :  { %577 = shalt.err (!%p574_p5)
}
  0x2d   :  { %65 = dma.hbm_to_vmem [thread:$0]  %s713_s5, 1024, %s60_s18, [#allocation9], %s607_s27, %s607_s27, %s608_s28  }
  0x2e   :  { %598 = dma.done.wait [#allocation3], 64  }
  0x2f   :  { %599 = vsyncadd [#allocation3], 4294967232 }
  0x30   :  { %600 = dma.done.wait [#allocation6], 1152  }
  0x31   :  { %601 = vsyncadd [#allocation6], 4294966144 }
  0x32   :  { %602 = dma.done.wait [#allocation9], 1024  }
  0x33   :  { %603 = vsyncadd [#allocation9], 4294966272  ;;  %v612_v0 = vmov 0.0   ;;  %vm613_vm0 = vmmov 0   ;;  %v481_v1 = vld [vmem:[#allocation5] sm:$0xff]   ;;  %vm97_vm1 = vcmask 130048  }
  0x34   :  { %426 = vmatprep.subr.bf16.mxu0 %v612_v0  ;;  %428 = vmatprep.mubr.msk.bf16.mxu0 %vm613_vm0, %v612_v0  ;;  %v81_v2 = vld [vmem:[#allocation2] sm:$0xf]  ;;  %v482_v3 = vld [vmem:[#allocation7 + $0x38] sm:$0xff]   ;;  %v484_v5 = vld [vmem:[#allocation7 + $0x28] sm:$0xff]   ;;  %s614_s24 = smov [#allocation10]  }
  0x35   :  { %432 = vmatprep.subr.bf16.mxu1 %v612_v0  ;;  %448 = vmatprep.mubr.msk.bf16.mxu1 %vm613_vm0, %v612_v0  ;;  %v483_v4 = vld [vmem:[#allocation7 + $0x30] sm:$0xff]   ;;  %v485_v6 = vld [vmem:[#allocation7 + $0x20] sm:$0xff]   ;;  %v486_v7 = vld [vmem:[#allocation7 + $0x18] sm:$0xff]   ;;  %s374_s25 = sshll.u32 %s614_s24, 4  ;;  %s375_s25 = int_to_ptr.vmem [resolvable:$true] %s374_s25 }
  0x36   :  { %427 = vmatpush3.bf16.msra.mxu0 %v481_v1  ;;  %433 = vmatpush3.bf16.msra.mxu1 %v482_v3  ;;  %v487_v8 = vld [vmem:[#allocation7 + $0x10] sm:$0xff]   ;;  %v488_v9 = vld [vmem:[#allocation7 + $0x8] sm:$0xff]   ;;  %v489_v10 = vld [vmem:[#allocation7] sm:$0xff]   ;;  %p583_p7 = scmp.lt.s32.totalorder %s375_s25, %s375_s25 }
  0x37   :  { %452 = vmatprep.subr.bf16.mxu0 %v612_v0  ;;  %434 = vmatprep.subr.bf16.mxu1 %v612_v0  ;;  %v490_v11 = vld [vmem:[#allocation8 + $0x38] sm:$0xff]   ;;  %v491_v12 = vld [vmem:[#allocation8 + $0x30] sm:$0xff]   ;;  %v492_v13 = vld [vmem:[#allocation8 + $0x28] sm:$0xff]  }
  0x38   :  { %v493_v14 = vld [vmem:[#allocation8 + $0x20] sm:$0xff]   ;;  %v494_v15 = vld [vmem:[#allocation8 + $0x18] sm:$0xff]   ;;  %v495_v16 = vld [vmem:[#allocation8 + $0x10] sm:$0xff]  }
  0x39   :  { %429 = vmatmul.mubr.msk.bf16.vlgmr.msra.gmra.mxu0 %vm97_vm1, %v81_v2  ;;  %v385_v17 = vld [vmem:[%s710_s2] ss:$0 sm:$0xff]  ;;  %v496_v25 = vld [vmem:[#allocation8 + $0x8] sm:$0xff]   ;;  %v497_v26 = vld [vmem:[#allocation8] sm:$0xff]  }
  0x3a   :  { %468 = vmatprep.mubr.msk.bf16.mxu0 %vm613_vm0, %v612_v0  ;;  %435 = vmatpush3.bf16.msra.mxu1 %v483_v4  ;;  %v388_v27 = vld [vmem:[%s712_s4] ss:$0 sm:$0xff]  ;;  %s578_s4 = scalar_lea.vmem %s375_s25, 128 }
  0x3b   :  { %436 = vmatprep.subr.bf16.mxu1 %v612_v0  ;;  %453 = vmatpush3.bf16.msra.mxu0 %v490_v11  ;;  %v397_v35 = vld [vmem:[%s714_s6] ss:$0 sm:$0xff]  ;;  %p579_p6 = scmp.ne.s32.totalorder %s375_s25, %s578_s4  ;;  %p584_p8 = scmp.lt.s32.totalorder %s578_s4, %s578_s4 }
  0x3c   :  { %454 = vmatprep.subr.bf16.mxu0 %v612_v0 }
  0x3d   :  { %p585_p9 = por %p584_p8, %p583_p7 }
  0x3e   :  { %437 = vmatpush3.bf16.msra.mxu1 %v484_v5 }
  0x3f   :  { %438 = vmatprep.subr.bf16.mxu1 %v612_v0  ;;  %455 = vmatpush3.bf16.msra.mxu0 %v491_v12  ;;  %p586_p10 = pnand %p585_p9, %p579_p6 }
  0x40   :  { %456 = vmatprep.subr.bf16.mxu0 %v612_v0 }
  0x42   :  { %439 = vmatpush3.bf16.msra.mxu1 %v485_v6 }
  0x43   :  { %440 = vmatprep.subr.bf16.mxu1 %v612_v0  ;;  %457 = vmatpush3.bf16.msra.mxu0 %v492_v13 }
  0x44   :  { %458 = vmatprep.subr.bf16.mxu0 %v612_v0 }
  0x46   :  { %441 = vmatpush3.bf16.msra.mxu1 %v486_v7 }
  0x47   :  { %442 = vmatprep.subr.bf16.mxu1 %v612_v0  ;;  %459 = vmatpush3.bf16.msra.mxu0 %v493_v14 }
  0x48   :  { %460 = vmatprep.subr.bf16.mxu0 %v612_v0 }
  0x4a   :  { %443 = vmatpush3.bf16.msra.mxu1 %v487_v8 }
  0x4b   :  { %444 = vmatprep.subr.bf16.mxu1 %v612_v0  ;;  %461 = vmatpush3.bf16.msra.mxu0 %v494_v15 }
  0x4c   :  { %462 = vmatprep.subr.bf16.mxu0 %v612_v0 }
  0x4e   :  { %445 = vmatpush3.bf16.msra.mxu1 %v488_v9 }
  0x4f   :  { %446 = vmatprep.subr.bf16.mxu1 %v612_v0  ;;  %463 = vmatpush3.bf16.msra.mxu0 %v495_v16 }
  0x50   :  { %464 = vmatprep.subr.bf16.mxu0 %v612_v0 }
  0x52   :  { %447 = vmatpush3.bf16.msra.mxu1 %v489_v10 }
  0x53   :  { %465 = vmatpush3.bf16.msra.mxu0 %v496_v25 }
  0x54   :  { %466 = vmatprep.subr.bf16.mxu0 %v612_v0 }
  0x57   :  { %467 = vmatpush3.bf16.msra.mxu0 %v497_v26 }
  0xf9   :  { %v135_v18 = vpop.f32.mrf.mxu0 }
  0xfa   :  { %v136_v19 = vadd.f32 %v385_v17, %v135_v18 }
  0xfb   :  { %v430_v20 = vpop.f32.mrf.mxu0 }
  0xfc   :  { %v141_v21 = vmax.f32 %v136_v19, 0.0 }
  0xfd   :  { %v138_v22 = vpop.f32.mrf.mxu0 }
  0xfe   :  { %v142_v23 = vpack.c.bf16 %v141_v21, %v141_v21 }
  0xff   :  { %v431_v24 = vpop.f32.mrf.mxu0 }
 0x100   :  { %449 = vmatmul.mubr.bf16.vlgmr.msra.gmra.mxu1 %v142_v23 }
 0x1c0   :  { %v248_v28 = vpop.f32.mrf.mxu1 }
 0x1c1   :  { %v249_v29 = vadd.f32 %v388_v27, %v248_v28 }
 0x1c2   :  { %v450_v30 = vpop.f32.mrf.mxu1 }
 0x1c3   :  { %v254_v31 = vmax.f32 %v249_v29, 0.0 }
 0x1c4   :  { %v251_v32 = vpop.f32.mrf.mxu1 }
 0x1c5   :  { %v255_v33 = vpack.c.bf16 %v254_v31, %v254_v31 }
 0x1c6   :  { %v451_v34 = vpop.f32.mrf.mxu1 }
 0x1c7   :  { %469 = vmatmul.mubr.bf16.vlgmr.msra.gmra.mxu0 %v255_v33 }
 0x287   :  { %v361_v36 = vpop.f32.mrf.mxu0 }
 0x288   :  { %v362_v37 = vadd.f32 %v397_v35, %v361_v36 }
 0x289   :  { %v470_v38 = vpop.f32.mrf.mxu0 }
 0x28a   :  { %367 = vst [vmem:[#allocation10] sm:$0xff] %v362_v37 }
 0x28b   :  { %v364_v39 = vpop.f32.mrf.mxu0 }
 0x28c   :  { %589 = shalt.err (!%p586_p10)
}
 0x28d   :  { %377 = dma.vmem_to_hbm [thread:$0]  %s375_s25, 128, %s715_s7, [#allocation4]   ;;  %v471_v40 = vpop.f32.mrf.mxu0 }
 0x28e   :  { %604 = dma.done.wait [#allocation4], 128  }
 0x28f   :  { %605 = vsyncadd [#allocation4], 4294967168 }
 0x290   :  { %381 = vsyncpa [#allocation3], 1 }
 0x291   :  { %382 = vsyncpa [#allocation6], 1 }
 0x292   :  { %383 = vsyncpa [#allocation9], 1 }
 0x293   :  { %384 = vsyncpa [#allocation4], 1 }

</bundles_post_ra>
